<compile_context>
chip_gen: v7x
topology: tpu7x:2x2x1
jax: 0.10.0
libtpu: 0.0.40
codegen_flags: <defaults>
</compile_context>

<pallas_src>
import functools

import jax
import jax.numpy as jnp
from jax.experimental import pallas as pl
from jax.experimental.pallas import tpu as pltpu

LN_EPS = 1e-5  # torch.nn.LayerNorm default


# ----------------------------- fused kernel ----------------------------------


def _fused_mlp_kernel(*refs, n_layers, use_feature_norm, use_relu, compute_dtype):
    """One batch tile through the whole MLP: [pre-LN] -> (Linear->act->LN)^L.

    refs layout:
      x_ref,
      [fn_gamma_ref, fn_beta_ref]            (if use_feature_norm)
      (w_ref, b_ref, ln_g_ref, ln_b_ref) * n_layers,
      o_ref
    """
    it = iter(refs)
    x_ref = next(it)
    if use_feature_norm:
        fn_g_ref = next(it)
        fn_b_ref = next(it)
    layer_refs = [(next(it), next(it), next(it), next(it)) for _ in range(n_layers)]
    o_ref = next(it)

    def _ln(y, g, b):
        # centered two-pass: one subtract reused for variance + normalize
        mean = jnp.mean(y, axis=-1, keepdims=True)
        yc = y - mean
        var = jnp.mean(yc * yc, axis=-1, keepdims=True)
        return yc * jax.lax.rsqrt(var + LN_EPS) * g + b

    x = x_ref[...].astype(jnp.float32)
    if use_feature_norm:
        x = _ln(x, fn_g_ref[...].astype(jnp.float32), fn_b_ref[...].astype(jnp.float32))

    for (w_ref, b_ref, g_ref, beta_ref) in layer_refs:
        lhs = x.astype(compute_dtype)
        rhs = w_ref[...].astype(compute_dtype)
        y = jnp.dot(lhs, rhs, preferred_element_type=jnp.float32)
        y = y + b_ref[...].astype(jnp.float32)
        if use_relu:
            y = jnp.maximum(y, 0.0)
        else:
            y = jnp.tanh(y)
        x = _ln(y, g_ref[...].astype(jnp.float32), beta_ref[...].astype(jnp.float32))

    o_ref[...] = x.astype(o_ref.dtype)


# ----------------------------- wrapper ----------------------------------------


def _round_up(n, m):
    return ((n + m - 1) // m) * m


def mlp_base_forward(
    params,
    x,
    *,
    use_feature_normalization=True,
    use_relu=True,
    compute_dtype=jnp.float32,
    batch_tile=256,
):
    """Fused MLPBase forward: a single pallas_call, batch-tiled grid."""
    B, obs_dim = x.shape
    layers = [params["fc1"]] + list(params["fc2"])
    n_layers = len(layers)
    H = layers[0]["w"].shape[1]

    # --- batch tile: multiple of 8 sublanes; pad batch to a tile multiple ----
    tb = max(8, min(int(batch_tile), _round_up(B, 8)))
    tb = _round_up(tb, 8)
    b_pad = _round_up(B, tb)
    if b_pad != B:
        x = jnp.pad(x, ((0, b_pad - B), (0, 0)))  # zero rows: LN stays finite

    # --- assemble flat inputs + specs ----------------------------------------
    def _resident(shape):
        # whole-array block, same block for every grid step -> stays in VMEM
        return pl.BlockSpec(shape, lambda i: tuple(0 for _ in shape))

    inputs = [x]
    in_specs = [pl.BlockSpec((tb, obs_dim), lambda i: (i, 0))]

    if use_feature_normalization:
        fn = params["feature_norm"]
        inputs += [fn["gamma"].reshape(1, obs_dim), fn["beta"].reshape(1, obs_dim)]
        in_specs += [_resident((1, obs_dim)), _resident((1, obs_dim))]

    for lyr in layers:
        din, dout = lyr["w"].shape
        inputs += [
            lyr["w"],
            lyr["b"].reshape(1, dout),
            lyr["ln_gamma"].reshape(1, dout),
            lyr["ln_beta"].reshape(1, dout),
        ]
        in_specs += [
            _resident((din, dout)),
            _resident((1, dout)),
            _resident((1, dout)),
            _resident((1, dout)),
        ]

    # --- cost estimate + VMEM budget (capped for v7x's 64 MiB per TC) --------
    flops = 2 * b_pad * sum(l["w"].shape[0] * l["w"].shape[1] for l in layers)
    transcendentals = b_pad * (n_layers + (1 if use_feature_normalization else 0))
    if not use_relu:
        transcendentals += b_pad * H * n_layers  # tanh on EUP
    param_bytes = sum(int(a.size) * a.dtype.itemsize for a in inputs[1:])
    act_bytes = x.size * x.dtype.itemsize + b_pad * H * x.dtype.itemsize
    bytes_accessed = param_bytes + act_bytes
    tile_bytes = 2 * (tb * obs_dim + tb * H) * 4  # double-buffered in/out tiles
    vmem_limit = int(min(64 << 20, max(32 << 20, 2 * param_bytes + 2 * tile_bytes + (4 << 20))))

    kernel = functools.partial(
        _fused_mlp_kernel,
        n_layers=n_layers,
        use_feature_norm=use_feature_normalization,
        use_relu=use_relu,
        compute_dtype=compute_dtype,
    )

    out = pl.pallas_call(
        kernel,
        out_shape=jax.ShapeDtypeStruct((b_pad, H), x.dtype),
        grid=(b_pad // tb,),
        in_specs=in_specs,
        out_specs=pl.BlockSpec((tb, H), lambda i: (i, 0)),
        compiler_params=pltpu.CompilerParams(
            dimension_semantics=("parallel",),  # megacore sharding on v7x
            vmem_limit_bytes=vmem_limit,
        ),
        cost_estimate=pl.CostEstimate(
            flops=int(flops),
            transcendentals=int(transcendentals),
            bytes_accessed=int(bytes_accessed),
        ),
    )(*inputs)

    return out[:B]


# ----------------------------- params -----------------------------------------


def init_mlp_base_params(
    key,
    obs_dim,
    hidden_size,
    layer_N,
    use_feature_normalization=True,
    use_orthogonal=True,
    use_relu=True,
    dtype=jnp.float32,
):
    """Deterministic parameter init mirroring MLPBase.__init__ shapes/gains."""
    gain = jnp.sqrt(2.0) if use_relu else 5.0 / 3.0  # calculate_gain(relu/tanh)
    if use_orthogonal:
        w_init = jax.nn.initializers.orthogonal(scale=gain)
    else:
        w_init = jax.nn.initializers.variance_scaling(
            scale=gain * gain, mode="fan_avg", distribution="uniform"
        )  # xavier_uniform_ with gain

    params = {}
    if use_feature_normalization:
        params["feature_norm"] = {
            "gamma": jnp.ones((obs_dim,), dtype),
            "beta": jnp.zeros((obs_dim,), dtype),
        }

    keys = jax.random.split(key, layer_N + 1)

    def make_layer(k, din, dout):
        # torch stores (out, in); store transposed (in, out) for x @ W.
        w = w_init(k, (dout, din), dtype).T
        return {
            "w": w,
            "b": jnp.zeros((dout,), dtype),
            "ln_gamma": jnp.ones((dout,), dtype),
            "ln_beta": jnp.zeros((dout,), dtype),
        }

    params["fc1"] = make_layer(keys[0], obs_dim, hidden_size)
    params["fc2"] = [
        make_layer(keys[i + 1], hidden_size, hidden_size) for i in range(layer_N)
    ]
    return params


# ----------------------------- reference (pure JAX) ---------------------------


def _ln_ref(x, g, b):
    m = jnp.mean(x, axis=-1, keepdims=True)
    v = jnp.mean((x - m) ** 2, axis=-1, keepdims=True)
    return (x - m) * jax.lax.rsqrt(v + LN_EPS) * g + b


def mlp_base_ref(params, x, *, use_feature_normalization=True, use_relu=True):
    act = (lambda z: jnp.maximum(z, 0.0)) if use_relu else jnp.tanh
    if use_feature_normalization:
        fn = params["feature_norm"]
        x = _ln_ref(x, fn["gamma"], fn["beta"])
    for lyr in [params["fc1"]] + list(params["fc2"]):
        y = act(x @ lyr["w"] + lyr["b"])
        x = _ln_ref(y, lyr["ln_gamma"], lyr["ln_beta"])
    return x


# ----------------------------- main -------------------------------------------

if __name__ == "__main__":
    # Small config consistent with MLPBase (args.hidden_size, args.layer_N).
    batch = 20          # deliberately not a multiple of the tile -> pad path
    obs_dim = 32
    hidden_size = 64
    layer_N = 1
    use_feature_normalization = True
    use_relu = True

    key = jax.random.PRNGKey(0)
    k_param, k_x = jax.random.split(key)
    params = init_mlp_base_params(
        k_param,
        obs_dim,
        hidden_size,
        layer_N,
        use_feature_normalization=use_feature_normalization,
        use_orthogonal=True,
        use_relu=use_relu,
    )
    x = jax.random.normal(k_x, (batch, obs_dim), jnp.float32)

    ref = mlp_base_ref(
        params,
        x,
        use_feature_normalization=use_feature_normalization,
        use_relu=use_relu,
    )

    # f32 MXU path (small tile so the batch grid actually has several steps)
    out = mlp_base_forward(
        params,
        x,
        use_feature_normalization=use_feature_normalization,
        use_relu=use_relu,
        compute_dtype=jnp.float32,
        batch_tile=8,
    )
    out = jax.block_until_ready(out)
    assert out.shape == (batch, hidden_size)
    assert jnp.allclose(out, ref, atol=1e-5, rtol=1e-5), "f32 mismatch vs JAX reference"

    # bf16 MXU-input path (v6e/v7x peak matmul throughput), f32 accumulation/LN
    out_bf16 = mlp_base_forward(
        params,
        x,
        use_feature_normalization=use_feature_normalization,
        use_relu=use_relu,
        compute_dtype=jnp.bfloat16,
        batch_tile=8,
    )
    out_bf16 = jax.block_until_ready(out_bf16)
    assert out_bf16.shape == (batch, hidden_size)
    assert jnp.allclose(out_bf16, ref, atol=1e-1, rtol=1e-1), "bf16 mismatch vs JAX reference"

    print("KERNEL_OK")
</pallas_src>

<mosaic_0001>
module attributes {stable_mosaic.version = 11 : i64} {
  func.func @_fused_mlp_kernel(%arg0: i32, %arg1: memref<8x32xf32, #tpu.memory_space<vmem>>, %arg2: memref<1x32xf32, #tpu.memory_space<vmem>>, %arg3: memref<1x32xf32, #tpu.memory_space<vmem>>, %arg4: memref<32x64xf32, #tpu.memory_space<vmem>>, %arg5: memref<1x64xf32, #tpu.memory_space<vmem>>, %arg6: memref<1x64xf32, #tpu.memory_space<vmem>>, %arg7: memref<1x64xf32, #tpu.memory_space<vmem>>, %arg8: memref<64x64xf32, #tpu.memory_space<vmem>>, %arg9: memref<1x64xf32, #tpu.memory_space<vmem>>, %arg10: memref<1x64xf32, #tpu.memory_space<vmem>>, %arg11: memref<1x64xf32, #tpu.memory_space<vmem>>, %arg12: memref<8x64xf32, #tpu.memory_space<vmem>>) attributes {dimension_semantics = [#tpu.dimension_semantics<parallel>], iteration_bounds = array<i64: 3>, scalar_prefetch = 0 : i64, scratch_operands = 0 : i64, tpu.core_type = #tpu.core_type<tc>, window_params = [{transform_indices = @transform_0, window_bounds = array<i64: 8, 32>}, {pipeline_mode = #tpu.pipeline_mode<synchronous>, transform_indices = @transform_1, window_bounds = array<i64: 1, 32>}, {pipeline_mode = #tpu.pipeline_mode<synchronous>, transform_indices = @transform_2, window_bounds = array<i64: 1, 32>}, {pipeline_mode = #tpu.pipeline_mode<synchronous>, transform_indices = @transform_3, window_bounds = array<i64: 32, 64>}, {pipeline_mode = #tpu.pipeline_mode<synchronous>, transform_indices = @transform_4, window_bounds = array<i64: 1, 64>}, {pipeline_mode = #tpu.pipeline_mode<synchronous>, transform_indices = @transform_5, window_bounds = array<i64: 1, 64>}, {pipeline_mode = #tpu.pipeline_mode<synchronous>, transform_indices = @transform_6, window_bounds = array<i64: 1, 64>}, {pipeline_mode = #tpu.pipeline_mode<synchronous>, transform_indices = @transform_7, window_bounds = array<i64: 64, 64>}, {pipeline_mode = #tpu.pipeline_mode<synchronous>, transform_indices = @transform_8, window_bounds = array<i64: 1, 64>}, {pipeline_mode = #tpu.pipeline_mode<synchronous>, transform_indices = @transform_9, window_bounds = array<i64: 1, 64>}, {pipeline_mode = #tpu.pipeline_mode<synchronous>, transform_indices = @transform_10, window_bounds = array<i64: 1, 64>}, {transform_indices = @transform_11, window_bounds = array<i64: 8, 64>}]} {
    %c0 = arith.constant 0 : index
    %c0_0 = arith.constant 0 : index
    %0 = vector.load %arg1[%c0, %c0_0] : memref<8x32xf32, #tpu.memory_space<vmem>>, vector<8x32xf32>
    %c0_1 = arith.constant 0 : index
    %c0_2 = arith.constant 0 : index
    %1 = vector.load %arg2[%c0_1, %c0_2] : memref<1x32xf32, #tpu.memory_space<vmem>>, vector<1x32xf32>
    %c0_3 = arith.constant 0 : index
    %c0_4 = arith.constant 0 : index
    %2 = vector.load %arg3[%c0_3, %c0_4] : memref<1x32xf32, #tpu.memory_space<vmem>>, vector<1x32xf32>
    %cst = arith.constant dense<0.000000e+00> : vector<8xf32>
    %3 = vector.multi_reduction <add>, %0, %cst [1] : vector<8x32xf32> to vector<8xf32>
    %4 = vector.shape_cast %3 : vector<8xf32> to vector<8x1xf32>
    %cst_5 = arith.constant 3.200000e+01 : f32
    %5 = vector.broadcast %cst_5 : f32 to vector<8x1xf32>
    %6 = arith.divf %4, %5 : vector<8x1xf32>
    %7 = vector.broadcast %6 : vector<8x1xf32> to vector<8x32xf32>
    %8 = arith.subf %0, %7 : vector<8x32xf32>
    %9 = arith.mulf %8, %8 : vector<8x32xf32>
    %cst_6 = arith.constant dense<0.000000e+00> : vector<8xf32>
    %10 = vector.multi_reduction <add>, %9, %cst_6 [1] : vector<8x32xf32> to vector<8xf32>
    %11 = vector.shape_cast %10 : vector<8xf32> to vector<8x1xf32>
    %cst_7 = arith.constant 3.200000e+01 : f32
    %12 = vector.broadcast %cst_7 : f32 to vector<8x1xf32>
    %13 = arith.divf %11, %12 : vector<8x1xf32>
    %cst_8 = arith.constant 9.99999974E-6 : f32
    %14 = vector.broadcast %cst_8 : f32 to vector<8x1xf32>
    %15 = arith.addf %13, %14 : vector<8x1xf32>
    %16 = math.rsqrt %15 : vector<8x1xf32>
    %17 = vector.broadcast %16 : vector<8x1xf32> to vector<8x32xf32>
    %18 = arith.mulf %8, %17 : vector<8x32xf32>
    %19 = vector.broadcast %1 : vector<1x32xf32> to vector<8x32xf32>
    %20 = arith.mulf %18, %19 : vector<8x32xf32>
    %21 = vector.broadcast %2 : vector<1x32xf32> to vector<8x32xf32>
    %22 = arith.addf %20, %21 : vector<8x32xf32>
    %c0_9 = arith.constant 0 : index
    %c0_10 = arith.constant 0 : index
    %23 = vector.load %arg4[%c0_9, %c0_10] : memref<32x64xf32, #tpu.memory_space<vmem>>, vector<32x64xf32>
    %cst_11 = arith.constant dense<0.000000e+00> : vector<8x64xf32>
    %24 = tpu.matmul %22, %23, %cst_11 {dimension_numbers = #tpu.dot_dimension_numbers<[1], [0], [0], [1], [0, 0, 1, 1], [], []>} : vector<8x32xf32>, vector<32x64xf32>, vector<8x64xf32> -> vector<8x64xf32>
    %c0_12 = arith.constant 0 : index
    %c0_13 = arith.constant 0 : index
    %25 = vector.load %arg5[%c0_12, %c0_13] : memref<1x64xf32, #tpu.memory_space<vmem>>, vector<1x64xf32>
    %26 = vector.broadcast %25 : vector<1x64xf32> to vector<8x64xf32>
    %27 = arith.addf %24, %26 : vector<8x64xf32>
    %cst_14 = arith.constant 0.000000e+00 : f32
    %28 = vector.broadcast %cst_14 : f32 to vector<8x64xf32>
    %29 = arith.maximumf %27, %28 : vector<8x64xf32>
    %c0_15 = arith.constant 0 : index
    %c0_16 = arith.constant 0 : index
    %30 = vector.load %arg6[%c0_15, %c0_16] : memref<1x64xf32, #tpu.memory_space<vmem>>, vector<1x64xf32>
    %c0_17 = arith.constant 0 : index
    %c0_18 = arith.constant 0 : index
    %31 = vector.load %arg7[%c0_17, %c0_18] : memref<1x64xf32, #tpu.memory_space<vmem>>, vector<1x64xf32>
    %cst_19 = arith.constant dense<0.000000e+00> : vector<8xf32>
    %32 = vector.multi_reduction <add>, %29, %cst_19 [1] : vector<8x64xf32> to vector<8xf32>
    %33 = vector.shape_cast %32 : vector<8xf32> to vector<8x1xf32>
    %cst_20 = arith.constant 6.400000e+01 : f32
    %34 = vector.broadcast %cst_20 : f32 to vector<8x1xf32>
    %35 = arith.divf %33, %34 : vector<8x1xf32>
    %36 = vector.broadcast %35 : vector<8x1xf32> to vector<8x64xf32>
    %37 = arith.subf %29, %36 : vector<8x64xf32>
    %38 = arith.mulf %37, %37 : vector<8x64xf32>
    %cst_21 = arith.constant dense<0.000000e+00> : vector<8xf32>
    %39 = vector.multi_reduction <add>, %38, %cst_21 [1] : vector<8x64xf32> to vector<8xf32>
    %40 = vector.shape_cast %39 : vector<8xf32> to vector<8x1xf32>
    %cst_22 = arith.constant 6.400000e+01 : f32
    %41 = vector.broadcast %cst_22 : f32 to vector<8x1xf32>
    %42 = arith.divf %40, %41 : vector<8x1xf32>
    %cst_23 = arith.constant 9.99999974E-6 : f32
    %43 = vector.broadcast %cst_23 : f32 to vector<8x1xf32>
    %44 = arith.addf %42, %43 : vector<8x1xf32>
    %45 = math.rsqrt %44 : vector<8x1xf32>
    %46 = vector.broadcast %45 : vector<8x1xf32> to vector<8x64xf32>
    %47 = arith.mulf %37, %46 : vector<8x64xf32>
    %48 = vector.broadcast %30 : vector<1x64xf32> to vector<8x64xf32>
    %49 = arith.mulf %47, %48 : vector<8x64xf32>
    %50 = vector.broadcast %31 : vector<1x64xf32> to vector<8x64xf32>
    %51 = arith.addf %49, %50 : vector<8x64xf32>
    %c0_24 = arith.constant 0 : index
    %c0_25 = arith.constant 0 : index
    %52 = vector.load %arg8[%c0_24, %c0_25] : memref<64x64xf32, #tpu.memory_space<vmem>>, vector<64x64xf32>
    %cst_26 = arith.constant dense<0.000000e+00> : vector<8x64xf32>
    %53 = tpu.matmul %51, %52, %cst_26 {dimension_numbers = #tpu.dot_dimension_numbers<[1], [0], [0], [1], [0, 0, 1, 1], [], []>} : vector<8x64xf32>, vector<64x64xf32>, vector<8x64xf32> -> vector<8x64xf32>
    %c0_27 = arith.constant 0 : index
    %c0_28 = arith.constant 0 : index
    %54 = vector.load %arg9[%c0_27, %c0_28] : memref<1x64xf32, #tpu.memory_space<vmem>>, vector<1x64xf32>
    %55 = vector.broadcast %54 : vector<1x64xf32> to vector<8x64xf32>
    %56 = arith.addf %53, %55 : vector<8x64xf32>
    %cst_29 = arith.constant 0.000000e+00 : f32
    %57 = vector.broadcast %cst_29 : f32 to vector<8x64xf32>
    %58 = arith.maximumf %56, %57 : vector<8x64xf32>
    %c0_30 = arith.constant 0 : index
    %c0_31 = arith.constant 0 : index
    %59 = vector.load %arg10[%c0_30, %c0_31] : memref<1x64xf32, #tpu.memory_space<vmem>>, vector<1x64xf32>
    %c0_32 = arith.constant 0 : index
    %c0_33 = arith.constant 0 : index
    %60 = vector.load %arg11[%c0_32, %c0_33] : memref<1x64xf32, #tpu.memory_space<vmem>>, vector<1x64xf32>
    %cst_34 = arith.constant dense<0.000000e+00> : vector<8xf32>
    %61 = vector.multi_reduction <add>, %58, %cst_34 [1] : vector<8x64xf32> to vector<8xf32>
    %62 = vector.shape_cast %61 : vector<8xf32> to vector<8x1xf32>
    %cst_35 = arith.constant 6.400000e+01 : f32
    %63 = vector.broadcast %cst_35 : f32 to vector<8x1xf32>
    %64 = arith.divf %62, %63 : vector<8x1xf32>
    %65 = vector.broadcast %64 : vector<8x1xf32> to vector<8x64xf32>
    %66 = arith.subf %58, %65 : vector<8x64xf32>
    %67 = arith.mulf %66, %66 : vector<8x64xf32>
    %cst_36 = arith.constant dense<0.000000e+00> : vector<8xf32>
    %68 = vector.multi_reduction <add>, %67, %cst_36 [1] : vector<8x64xf32> to vector<8xf32>
    %69 = vector.shape_cast %68 : vector<8xf32> to vector<8x1xf32>
    %cst_37 = arith.constant 6.400000e+01 : f32
    %70 = vector.broadcast %cst_37 : f32 to vector<8x1xf32>
    %71 = arith.divf %69, %70 : vector<8x1xf32>
    %cst_38 = arith.constant 9.99999974E-6 : f32
    %72 = vector.broadcast %cst_38 : f32 to vector<8x1xf32>
    %73 = arith.addf %71, %72 : vector<8x1xf32>
    %74 = math.rsqrt %73 : vector<8x1xf32>
    %75 = vector.broadcast %74 : vector<8x1xf32> to vector<8x64xf32>
    %76 = arith.mulf %66, %75 : vector<8x64xf32>
    %77 = vector.broadcast %59 : vector<1x64xf32> to vector<8x64xf32>
    %78 = arith.mulf %76, %77 : vector<8x64xf32>
    %79 = vector.broadcast %60 : vector<1x64xf32> to vector<8x64xf32>
    %80 = arith.addf %78, %79 : vector<8x64xf32>
    %c0_39 = arith.constant 0 : index
    %c0_40 = arith.constant 0 : index
    %81 = vector.load %arg12[%c0_39, %c0_40] : memref<8x64xf32, #tpu.memory_space<vmem>>, vector<8x64xf32>
    tpu.vector_store %arg12[%c0_39, %c0_40], %80 {strides = array<i32>} : memref<8x64xf32, #tpu.memory_space<vmem>>, vector<8x64xf32>,
    return
  }
  func.func @transform_0(%arg0: i32) -> (i32, i32) {
    %c0_i32 = arith.constant 0 : i32
    %c0_i32_0 = arith.constant 0 : i32
    return %arg0, %c0_i32 : i32, i32
  }
  func.func @transform_1(%arg0: i32) -> (i32, i32) {
    %c0_i32 = arith.constant 0 : i32
    %c0_i32_0 = arith.constant 0 : i32
    %c0_i32_1 = arith.constant 0 : i32
    return %c0_i32, %c0_i32_0 : i32, i32
  }
  func.func @transform_2(%arg0: i32) -> (i32, i32) {
    %c0_i32 = arith.constant 0 : i32
    %c0_i32_0 = arith.constant 0 : i32
    %c0_i32_1 = arith.constant 0 : i32
    return %c0_i32, %c0_i32_0 : i32, i32
  }
  func.func @transform_3(%arg0: i32) -> (i32, i32) {
    %c0_i32 = arith.constant 0 : i32
    %c0_i32_0 = arith.constant 0 : i32
    %c0_i32_1 = arith.constant 0 : i32
    return %c0_i32, %c0_i32_0 : i32, i32
  }
  func.func @transform_4(%arg0: i32) -> (i32, i32) {
    %c0_i32 = arith.constant 0 : i32
    %c0_i32_0 = arith.constant 0 : i32
    %c0_i32_1 = arith.constant 0 : i32
    return %c0_i32, %c0_i32_0 : i32, i32
  }
  func.func @transform_5(%arg0: i32) -> (i32, i32) {
    %c0_i32 = arith.constant 0 : i32
    %c0_i32_0 = arith.constant 0 : i32
    %c0_i32_1 = arith.constant 0 : i32
    return %c0_i32, %c0_i32_0 : i32, i32
  }
  func.func @transform_6(%arg0: i32) -> (i32, i32) {
    %c0_i32 = arith.constant 0 : i32
    %c0_i32_0 = arith.constant 0 : i32
    %c0_i32_1 = arith.constant 0 : i32
    return %c0_i32, %c0_i32_0 : i32, i32
  }
  func.func @transform_7(%arg0: i32) -> (i32, i32) {
    %c0_i32 = arith.constant 0 : i32
    %c0_i32_0 = arith.constant 0 : i32
    %c0_i32_1 = arith.constant 0 : i32
    return %c0_i32, %c0_i32_0 : i32, i32
  }
  func.func @transform_8(%arg0: i32) -> (i32, i32) {
    %c0_i32 = arith.constant 0 : i32
    %c0_i32_0 = arith.constant 0 : i32
    %c0_i32_1 = arith.constant 0 : i32
    return %c0_i32, %c0_i32_0 : i32, i32
  }
  func.func @transform_9(%arg0: i32) -> (i32, i32) {
    %c0_i32 = arith.constant 0 : i32
    %c0_i32_0 = arith.constant 0 : i32
    %c0_i32_1 = arith.constant 0 : i32
    return %c0_i32, %c0_i32_0 : i32, i32
  }
  func.func @transform_10(%arg0: i32) -> (i32, i32) {
    %c0_i32 = arith.constant 0 : i32
    %c0_i32_0 = arith.constant 0 : i32
    %c0_i32_1 = arith.constant 0 : i32
    return %c0_i32, %c0_i32_0 : i32, i32
  }
  func.func @transform_11(%arg0: i32) -> (i32, i32) {
    %c0_i32 = arith.constant 0 : i32
    %c0_i32_0 = arith.constant 0 : i32
    return %arg0, %c0_i32 : i32, i32
  }
}

</mosaic_0001>

<bundles_post_ra>
// kernel: tpu_custom_call.1
= control target key start
LH: loop header
LB: loop body
LE: loop exit
PB: predicated region body
PF: predicated region fallthrough
CT: control target
= control target key end

     0   :  { %s1451_s0 = inlined_call_operand.hbm [shape: f32[24,32], index: 0, kind: input, shape index: {}]   ;;  %s1452_s1 = inlined_call_operand.vmem [shape: f32[1,32], index: 1, kind: input, shape index: {}]   ;;  %s1453_s2 = inlined_call_operand.vmem [shape: f32[1,32], index: 2, kind: input, shape index: {}]   ;;  %s1454_s3 = inlined_call_operand.hbm [shape: f32[32,64], index: 3, kind: input, shape index: {}]   ;;  %s1455_s4 = inlined_call_operand.vmem [shape: f32[1,64], index: 4, kind: input, shape index: {}]   ;;  %s1456_s5 = inlined_call_operand.vmem [shape: f32[1,64], index: 5, kind: input, shape index: {}]   ;;  %s1457_s6 = inlined_call_operand.vmem [shape: f32[1,64], index: 6, kind: input, shape index: {}]   ;;  %s1458_s7 = inlined_call_operand.hbm [shape: f32[64,64], index: 7, kind: input, shape index: {}]   ;;  %s1459_s8 = inlined_call_operand.vmem [shape: f32[1,64], index: 8, kind: input, shape index: {}]   ;;  %s1460_s9 = inlined_call_operand.vmem [shape: f32[1,64], index: 9, kind: input, shape index: {}]   ;;  %s1461_s10 = inlined_call_operand.vmem [shape: f32[1,64], index: 10, kind: input, shape index: {}]   ;;  %s1462_s11 = inlined_call_operand.hbm [shape: f32[24,64], index: 11, kind: output, shape index: {}]  }
   0x1   :  { %1469 = sst [smem:[#allocation14_spill]] %s1462_s11 }
   0x2   :  { %16 = vsyncpa [#allocation3], 0 }
   0x3   :  { %18 = vsyncpa [#allocation3 + $0x1], 0 }
   0x4   :  { %19 = vsyncpa [#allocation6], 0 }
   0x5   :  { %20 = vsyncpa [#allocation4], 0 }
   0x6   :  { %22 = vsyncpa [#allocation4 + $0x1], 0  ;;  %s1194_s17 = smov 0   ;;  %s1196_s18 = smov 0  }
   0x7   :  { %s1198_s19 = smov 0   ;;  %s1200_s20 = smov 0  }
   0x8 LB: > { %1470 = sst [smem:[#allocation12_spill]] %s1111_s17  ;;  %s1215_s21 = sadd.s32 4294967295, %s1123_s20   ;;  %s1123_s20 = sphi %s1200_s20, %s1490_s20   ;;  %s1119_s19 = sphi %s1198_s19, %s1489_s19   ;;  %s1115_s18 = sphi %s1196_s18, %s1488_s18   ;;  %s1111_s17 = sphi %s1194_s17, %s1487_s17  }
   0x9   : > { %s801_s22 = sadd.s32 4294967294, %s1123_s20   ;;  %p48_p0 = scmp.ne.s32.totalorder %s1115_s18, %s1111_s17 }
   0xa   : > { %p1463_p1 = scmp.eq.s32.totalorder %s1215_s21, 0  ;;  %p288_p3 = scmp.eq.s32.totalorder %s801_s22, 2 }
   0xb   : > { %p802_p5 = scmp.ge.s32.totalorder %s1123_s20, 1  ;;  %p295_p7 = scmp.lt.s32.totalorder %s1123_s20, 4 }
   0xc   : > { %p1224_p4 = por %p1463_p1, %p48_p0  ;;  %p1229_p6 = por %p288_p3, %p48_p0 }
   0xd   : > { %p1234_p8 = pnand %p802_p5, %p295_p7  ;;  %s1125_s26 = smov [#allocation5]  }
   0xe   : > { %s1471_s23 = scalar_select %p1224_p4, 1, 0 }
   0xf   : > { %s1472_s24 = scalar_select %p1229_p6, 1, 0 }
  0x10   : > { %s1474_s25 = scalar_select %p1234_p8, 1, 0 }
  0x11   : > { %1473 = sst [smem:[#allocation13_spill]] %s1472_s24  ;;  %s313_s27 = sshll.u32 %s1125_s26, 4  ;;  %s314_s27 = int_to_ptr.vmem [resolvable:$true] %s313_s27 }
  0x12   : > { %p901_p9 = pneg %p1234_p8  ;;  %s1126_s29 = smov [#allocation7]  }
  0x13   : > { %s335_s30 = sshll.u32 %s1126_s29, 4  ;;  %s967_s14 = scalar_lea.hbm %s1454_s3, 512  ;;  %s1246_s30 = int_to_ptr.vmem [resolvable:$true] %s335_s30 }
  0x14   : > { %p1242_p10 = pnand %p901_p9, %p1463_p1  ;;  %p968_p11 = scmp.ne.s32.totalorder %s1454_s3, %s967_s14 }
  0x15   : > { %p974_p3 = scmp.lt.u32.totalorder %s967_s14, %s1454_s3 }
  0x16   : > { %p969_p12 = pneg %p1242_p10 }
  0x18   : > { %p970_p13 = pnand %p969_p12, %p968_p11 }
  0x1a   : > { %p971_p0 = pneg %p970_p13 }
  0x1c   : > { %p976_p5 = pnand %p974_p3, %p971_p0 }
  0x1e   : > { %979 = shalt.err (!%p976_p5)
}
  0x1f   : > { %s980_s29 = scalar_lea.vmem %s314_s27, 512  ;;  %p988_p2 = scmp.lt.s32.totalorder %s314_s27, %s314_s27 }
  0x20   : > { %p981_p7 = scmp.ne.s32.totalorder %s314_s27, %s980_s29  ;;  %p989_p6 = scmp.lt.s32.totalorder %s980_s29, %s980_s29 }
  0x22   : > { %p983_p9 = pnand %p981_p7, %p969_p12  ;;  %p990_p4 = por %p989_p6, %p988_p2 }
  0x24   : > { %p984_p1 = pneg %p983_p9 }
  0x26   : > { %p991_p8 = pnand %p990_p4, %p984_p1 }
  0x28   : > { %994 = shalt.err (!%p991_p8)
}
  0x29   : > { %s1127_s12 = smov 128   ;;  %s1128_s13 = smov 8  }
  0x2a   : > { %904 = dma.hbm_to_vmem [thread:$0]  (!%p1242_p10), %s1454_s3, 512, %s314_s27, [#allocation6], %s1127_s12, %s1127_s12, %s1128_s13  }
  0x2b   : > { %s995_s26 = scalar_lea.hbm %s1458_s7, 1024 }
  0x2c   : > { %p996_p11 = scmp.ne.s32.totalorder %s1458_s7, %s995_s26  ;;  %p1002_p4 = scmp.lt.u32.totalorder %s995_s26, %s1458_s7 }
  0x2e   : > { %p998_p1 = pnand %p996_p11, %p969_p12 }
  0x30   : > { %p999_p2 = pneg %p998_p1 }
  0x32   : > { %p1004_p6 = pnand %p1002_p4, %p999_p2 }
  0x34   : > { %1007 = shalt.err (!%p1004_p6)
}
  0x35   : > { %s1008_s27 = scalar_lea.vmem %s1246_s30, 1024  ;;  %p1016_p3 = scmp.lt.s32.totalorder %s1246_s30, %s1246_s30 }
  0x36   : > { %p1009_p8 = scmp.ne.s32.totalorder %s1246_s30, %s1008_s27  ;;  %p1017_p5 = scmp.lt.s32.totalorder %s1008_s27, %s1008_s27 }
  0x38   : > { %p1011_p13 = pnand %p1009_p8, %p969_p12  ;;  %p1018_p7 = por %p1017_p5, %p1016_p3 }
  0x3a   : > { %p1012_p0 = pneg %p1011_p13 }
  0x3c   : > { %p1019_p9 = pnand %p1018_p7, %p1012_p0 }
  0x3e   : > { %1022 = shalt.err (!%p1019_p9)
}
  0x3f   : > { %907 = dma.hbm_to_vmem [thread:$0]  (!%p1242_p10), %s1458_s7, 1024, %s1246_s30, [#allocation6], %s1127_s12, %s1127_s12, %s1128_s13  }
  0x40   : > { %s1296_s24 = sadd.s32 1, %s1123_s20   ;;  %s35_s28 = sadd.s32 1, %s1119_s19 }
  0x41   : > { %s32_s14 = ssub.s32 %s1123_s20, %s1296_s24  ;;  %p42_p12 = scmp.ne.s32.totalorder %s1119_s19, %s1115_s18 }
  0x42   : > { %p33_p11 = scmp.eq.s32.totalorder %s32_s14, 0  ;;  %p43_p1 = scmp.eq.s32.totalorder %s1123_s20, 0 }
  0x43   : > { %p1476_p2 = scmp.eq.s32.totalorder %s1215_s21, 2  ;;  %p918_p6 = scmp.lt.s32.totalorder %s1123_s20, 3 }
  0x44   : > { %s1312_s16 = scalar_select %p33_p11, %s1119_s19, %s35_s28  }
  0x45   : > { %p1306_p4 = por %p1476_p2, %p42_p12  ;;  %p44_p8 = por %p43_p1, %p42_p12 }
  0x46   : > { %s358_s22 = sand.u32 1, %s1119_s19   ;;  %s807_s30 = sshll.u32 %s1123_s20, 7 }
  0x47   : > { %s806_s26 = sshll.u32 %s358_s22, 3  ;;  %s1319_s29 = scalar_lea.hbm %s1451_s0, %s807_s30 }
  0x48   : > { %s362_s27 = scalar_lea.vmem [#allocation2], %s806_s26  ;;  %p1323_p10 = pnand %p918_p6, %p44_p8 }
  0x49   : > { %s369_s11 = sshll.u32 %s362_s27, 4  ;;  %s359_s28 = scalar_lea.sflag [#allocation3], %s358_s22  ;;  %s1321_s11 = int_to_ptr.vmem [resolvable:$true] %s369_s11 }
  0x4a   : > { %s1023_s14 = scalar_lea.hbm %s1319_s29, 128  ;;  %p1025_p0 = pneg %p1323_p10 }
  0x4b   : > { %p1024_p13 = scmp.ne.s32.totalorder %s1319_s29, %s1023_s14  ;;  %s1028_s12 = scalar_lea.hbm %s1451_s0, 384 }
  0x4c   : > { %p1029_p7 = scmp.lt.u32.totalorder %s1319_s29, %s1451_s0  ;;  %p1030_p9 = scmp.lt.u32.totalorder %s1028_s12, %s1023_s14 }
  0x4d   : > { %p1026_p3 = pnand %p1025_p0, %p1024_p13  ;;  %p1032_p11 = scmp.lt.u32.totalorder %s1023_s14, %s1319_s29 }
  0x4e   : > { %p1031_p12 = por %p1030_p9, %p1029_p7 }
  0x4f   : > { %p1027_p5 = pneg %p1026_p3 }
  0x50   : > { %p1033_p1 = por %p1032_p11, %p1031_p12 }
  0x52   : > { %p1034_p2 = pnand %p1033_p1, %p1027_p5 }
  0x54   : > { %1037 = shalt.err (!%p1034_p2)
}
  0x55   : > { %s1038_s22 = scalar_lea.vmem %s1321_s11, 128  ;;  %s1129_s30 = smov [#allocation2]  }
  0x56   : > { %p1039_p6 = scmp.ne.s32.totalorder %s1321_s11, %s1038_s22  ;;  %s1043_s26 = sshll.u32 %s1129_s30, 4  ;;  %s1044_s26 = int_to_ptr.vmem [resolvable:$false] %s1043_s26 }
  0x57   : > { %s1045_s13 = scalar_lea.vmem %s1044_s26, 256  ;;  %p1046_p3 = scmp.lt.s32.totalorder %s1321_s11, %s1044_s26 }
  0x58   : > { %p1041_p8 = pnand %p1039_p6, %p1025_p0  ;;  %p1047_p7 = scmp.lt.s32.totalorder %s1045_s13, %s1038_s22 }
  0x5a   : > { %p1042_p13 = pneg %p1041_p8  ;;  %p1048_p9 = por %p1047_p7, %p1046_p3 }
  0x5c   : > { %p1049_p12 = pnand %p1048_p9, %p1042_p13 }
  0x5e   : > { %1052 = shalt.err (!%p1049_p12)
}
  0x5f   : > { %911 = dma.hbm_to_vmem [thread:$0]  (!%p1323_p10), %s1319_s29, 128, %s1321_s11, %s359_s28  }
  0x60   : > { %p1479_p5 = scmp.ne.s32.totalorder %s1474_s25, 0 }
  0x61   : > { %s1355_s14 = sand.u32 (!%p1479_p5), 1, %s1115_s18   ;;  %p1480_p0 = scmp.ne.s32.totalorder (!%p1479_p5), %s1471_s23, 0 }
  0x62   : > { %378 = sbr.rel (%p1479_p5) target bundleno = 1495 (0x5d7), region = 64  ;;  %s809_s12 = sshll.u32 (!%p1479_p5), %s1355_s14, 3 }
  0x63   : > { %s381_s27 = scalar_lea.sflag (!%p1479_p5), [#allocation3], %s1355_s14  ;;  %s384_s22 = scalar_lea.vmem (!%p1479_p5), [#allocation2], %s809_s12 }
  0x69   : > { %1098 = dma.done.wait (%p1480_p0), %s381_s27, 128  }
  0x6a   : > { %1100 = vsyncadd (%p1480_p0), %s381_s27, 4294967168  ;;  %p1481_p10 = scmp.eq.s32.totalorder %s1215_s21, 0 }
  0x6c   : > { %1102 = dma.done.wait (%p1481_p10), [#allocation6], 1536   ;;  %p1482_p11 = pmov %p1481_p10 }
  0x6d   : > { %vm434_vm0 = vcmask 261120   ;;  %v431_v0 = vld [vmem:[%s384_s22] sm:$0xff]  ;;  %v463_v7 = vld [vmem:[#allocation5] sm:$0xff]  ;;  %v464_v8 = vld [vmem:[#allocation5 + $0x8] sm:$0xff]  ;;  %v1130_v10 = vmov 0.0|0.0   ;;  %vm1131_vm1 = vmmov 0  }
  0x6e   : > { %1104 = vsyncadd (%p1482_p11), [#allocation6], 4294965760  ;;  %v435_v1 = vsel %vm434_vm0, %v431_v0, 0.0  ;;  %v465_v9 = vld [vmem:[#allocation5 + $0x10] sm:$0xff]  ;;  %871 = vmatprep.subr.bf16.mxu0 %v1130_v10  ;;  %v872_v11 = vpack.c.bf16 %v464_v8, %v463_v7  ;;  %v466_v12 = vld [vmem:[#allocation5 + $0x18] sm:$0xff]  ;;  %v1132_v13 = vmov 0.0   ;;  %877 = vmatprep.subr.bf16.mxu1 %v1130_v10 }
  0x6f   : > { %436 = vadd.xlane.f32.xlu0 %v435_v1  ;;  %849 = vmatprep.mubr.msk.f32.mxu0 %vm1131_vm1, %v1132_v13  ;;  %v875_v14 = vpack.c.bf16 %v466_v12, %v465_v9  ;;  %v813_v19 = vld [vmem:[%s1452_s1] ss:$0 sm:$0xff]  ;;  %vm550_vm2 = vcmask 523264   ;;  %v579_v35 = vld [vmem:[#allocation7] sm:$0xff]  ;;  %v580_v36 = vld [vmem:[#allocation7 + $0x8] sm:$0xff]  ;;  %s824_s28 = sshll.u32 %s1215_s21, 7 }
  0x70   : > { %868 = vmatprep.mubr.msk.f32.mxu1 %vm1131_vm1, %v1132_v13  ;;  %873 = vmatpush3.bf16.msra.mxu0 %v872_v11  ;;  %v814_v21 = vld [vmem:[%s1453_s2] ss:$0 sm:$0xff]  ;;  %v878_v37 = vpack.c.bf16 %v580_v36, %v579_v35  ;;  %v582_v39 = vld [vmem:[#allocation7 + $0x18] sm:$0xff]  ;;  %v583_v41 = vld [vmem:[#allocation7 + $0x20] sm:$0xff]  ;;  %s430_s30 = scalar_lea.vmem [#allocation8], %s809_s12  ;;  %s1483_s22 = sld [smem:[#allocation14_spill]] }
  0x71   : > { %874 = vmatprep.subr.bf16.mxu0 %v1130_v10  ;;  %v815_v24 = vld [vmem:[%s1455_s4] ss:$0 sm:$0xff]  ;;  %v584_v42 = vld [vmem:[#allocation7 + $0x28] sm:$0xff]  ;;  %v586_v45 = vld [vmem:[#allocation7 + $0x38] sm:$0xff]  ;;  %s712_s26 = sshll.u32 %s430_s30, 4  ;;  %s699_s25 = scalar_lea.sflag [#allocation4], %s1355_s14  ;;  %s1409_s26 = int_to_ptr.vmem [resolvable:$true] %s712_s26 }
  0x72   : > { %v581_v38 = vld [vmem:[#allocation7 + $0x10] sm:$0xff]  ;;  %879 = vmatpush3.bf16.msra.mxu1 %v878_v37  ;;  %v884_v43 = vpack.c.bf16 %v584_v42, %v583_v41  ;;  %s1053_s29 = scalar_lea.vmem %s1409_s26, 128  ;;  %s1133_s21 = smov [#allocation8]  }
  0x73   : > { %v881_v40 = vpack.c.bf16 %v582_v39, %v581_v38  ;;  %880 = vmatprep.subr.bf16.mxu1 %v1130_v10  ;;  %v585_v44 = vld [vmem:[#allocation7 + $0x30] sm:$0xff]  ;;  %p1054_p1 = scmp.ne.s32.totalorder %s1409_s26, %s1053_s29  ;;  %s1057_s12 = sshll.u32 %s1133_s21, 4  ;;  %s1058_s12 = int_to_ptr.vmem [resolvable:$false] %s1057_s12 }
  0x74   : > { %876 = vmatpush3.bf16.msra.mxu0 %v875_v14  ;;  %v887_v46 = vpack.c.bf16 %v586_v45, %v585_v44  ;;  %v817_v51 = vld [vmem:[%s1456_s5] ss:$0 sm:$0xff]  ;;  %s1059_s11 = scalar_lea.vmem %s1058_s12, 256  ;;  %p1060_p8 = scmp.lt.s32.totalorder %s1409_s26, %s1058_s12 }
  0x75   : > { %v818_v53 = vld [vmem:[%s1457_s6] ss:$0 sm:$0xff]  ;;  %p1055_p2 = pnand %p1054_p1, %p1306_p4  ;;  %p1061_p13 = scmp.lt.s32.totalorder %s1059_s11, %s1053_s29 }
  0x76   : > { %882 = vmatpush3.bf16.msra.mxu1 %v881_v40  ;;  %v819_v56 = vld [vmem:[%s1459_s8] ss:$0 sm:$0xff]  ;;  %s1407_s23 = scalar_lea.hbm %s1483_s22, %s824_s28 }
  0x77   : > { %883 = vmatprep.subr.bf16.mxu1 %v1130_v10  ;;  %v821_v7 = vld [vmem:[%s1460_s9] ss:$0 sm:$0xff]  ;;  %p1056_p6 = pneg %p1055_p2  ;;  %p1062_p3 = por %p1061_p13, %p1060_p8 }
  0x78   : > { %v822_v9 = vld [vmem:[%s1461_s10] ss:$0 sm:$0xff] }
  0x79   : > { %p1063_p7 = pnand %p1062_p3, %p1056_p6 }
  0x7a   : > { %885 = vmatpush3.bf16.msra.mxu1 %v884_v43 }
  0x7b   : > { %886 = vmatprep.subr.bf16.mxu1 %v1130_v10 }
  0x7e   : > { %888 = vmatpush3.bf16.msra.mxu1 %v887_v46 }
  0xfc   : > { %v437_v2 = vpop.xlane.xlu0 %436 }
  0xfd   : > { %v439_v3 = vmul.f32 0.03125, %v437_v2 }
  0xff   : > { %v440_v4 = vsub.f32 %v431_v0, %v439_v3 }
 0x101   : > { %v441_v5 = vmul.f32 %v440_v4, %v440_v4 }
 0x103   : > { %v442_v6 = vsel %vm434_vm0, %v441_v5, 0.0 }
 0x104   : > { %443 = vadd.xlane.f32.xlu0 %v442_v6 }
 0x191   : > { %v444_v15 = vpop.xlane.xlu0 %443 }
 0x192   : > { %v445_v16 = vmul.f32 0.03125, %v444_v15 }
 0x194   : > { %v446_v17 = vadd.f32 1e-05, %v445_v16 }
 0x196   : > { %961 = vrsqrt.f32 %v446_v17 }
 0x1a0   : > { %v962_v18 = vpop.eup %961 }
 0x1a1   : > { %v448_v20 = vmul.f32 %v962_v18, %v440_v4 }
 0x1a3   : > { %v455_v22 = vmul.f32 %v813_v19, %v448_v20 }
 0x1a5   : > { %v462_v23 = vadd.f32 %v814_v21, %v455_v22 }
 0x1a7   : > { %850 = vmatmul.mubr.msk.f32.vlgmr.msra.gmra.mrb[0].mxu0 %vm434_vm0, %v462_v23 }
 0x27a   : > { %v543_v25 = vpop.f32.mrb[0].mxu0 }
 0x27b   : > { %v544_v26 = vadd.f32 %v815_v24, %v543_v25  ;;  %v851_v27 = vpop.f32.mrb[1].mxu0 }
 0x27d   : > { %v547_v28 = vmax.f32 %v544_v26, 0.0 }
 0x27f   : > { %v551_v29 = vsel %vm550_vm2, %v547_v28, 0.0 }
 0x280   : > { %552 = vadd.xlane.f32.xlu1 %v551_v29 }
 0x30d   : > { %v553_v30 = vpop.xlane.xlu1 %552 }
 0x30e   : > { %v555_v31 = vmul.f32 0.015625, %v553_v30 }
 0x310   : > { %v556_v32 = vsub.f32 %v547_v28, %v555_v31 }
 0x312   : > { %v557_v33 = vmul.f32 %v556_v32, %v556_v32 }
 0x314   : > { %v558_v34 = vsel %vm550_vm2, %v557_v33, 0.0 }
 0x315   : > { %559 = vadd.xlane.f32.xlu1 %v558_v34 }
 0x3a2   : > { %v560_v47 = vpop.xlane.xlu1 %559 }
 0x3a3   : > { %v561_v48 = vmul.f32 0.015625, %v560_v47 }
 0x3a5   : > { %v562_v49 = vadd.f32 1e-05, %v561_v48 }
 0x3a7   : > { %963 = vrsqrt.f32 %v562_v49 }
 0x3b1   : > { %v964_v50 = vpop.eup %963 }
 0x3b2   : > { %v564_v52 = vmul.f32 %v964_v50, %v556_v32 }
 0x3b4   : > { %v571_v54 = vmul.f32 %v817_v51, %v564_v52 }
 0x3b6   : > { %v578_v55 = vadd.f32 %v818_v53, %v571_v54 }
 0x3b8   : > { %869 = vmatmul.mubr.msk.f32.vlgmr.msra.gmra.mrb[0].mxu1 %vm550_vm2, %v578_v55 }
 0x48b   : > { %v663_v57 = vpop.f32.mrb[0].mxu1 }
 0x48c   : > { %v664_v58 = vadd.f32 %v819_v56, %v663_v57  ;;  %v870_v59 = vpop.f32.mrb[1].mxu1 }
 0x48e   : > { %v667_v60 = vmax.f32 %v664_v58, 0.0 }
 0x490   : > { %v670_v61 = vsel %vm550_vm2, %v667_v60, 0.0 }
 0x491   : > { %671 = vadd.xlane.f32.xlu0 %v670_v61 }
 0x51e   : > { %v672_v62 = vpop.xlane.xlu0 %671 }
 0x51f   : > { %v673_v63 = vmul.f32 0.015625, %v672_v62 }
 0x521   : > { %v674_v0 = vsub.f32 %v667_v60, %v673_v63 }
 0x523   : > { %v675_v1 = vmul.f32 %v674_v0, %v674_v0 }
 0x525   : > { %v676_v2 = vsel %vm550_vm2, %v675_v1, 0.0 }
 0x526   : > { %677 = vadd.xlane.f32.xlu1 %v676_v2 }
 0x5b3   : > { %v678_v3 = vpop.xlane.xlu1 %677 }
 0x5b4   : > { %v679_v4 = vmul.f32 0.015625, %v678_v3 }
 0x5b6   : > { %v680_v5 = vadd.f32 1e-05, %v679_v4 }
 0x5b8   : > { %965 = vrsqrt.f32 %v680_v5 }
 0x5c2   : > { %v966_v6 = vpop.eup %965 }
 0x5c3   : > { %v682_v8 = vmul.f32 %v966_v6, %v674_v0 }
 0x5c5   : > { %v689_v10 = vmul.f32 %v821_v7, %v682_v8 }
 0x5c7   : > { %v696_v11 = vadd.f32 %v822_v9, %v689_v10 }
 0x5c9   : > { %697 = vst.msk [vmem:[%s430_s30] sm:$0xff] %vm550_vm2, %v696_v11 }
 0x5ca   : > { %1066 = shalt.err (!%p1063_p7)
}
 0x5cb   : > { %s1067_s14 = scalar_lea.hbm %s1407_s23, 128  ;;  %s1071_s30 = scalar_lea.hbm %s1483_s22, 384 }
 0x5cc   : > { %p1068_p9 = scmp.ne.s32.totalorder %s1407_s23, %s1067_s14  ;;  %p1072_p0 = scmp.lt.u32.totalorder %s1407_s23, %s1483_s22 }
 0x5cd   : > { %p1073_p10 = scmp.lt.u32.totalorder %s1071_s30, %s1067_s14  ;;  %p1075_p1 = scmp.lt.u32.totalorder %s1067_s14, %s1407_s23 }
 0x5ce   : > { %p1069_p12 = pnand %p1068_p9, %p1306_p4 }
 0x5cf   : > { %p1074_p11 = por %p1073_p10, %p1072_p0 }
 0x5d0   : > { %p1070_p5 = pneg %p1069_p12 }
 0x5d1   : > { %p1076_p2 = por %p1075_p1, %p1074_p11 }
 0x5d3   : > { %p1077_p6 = pnand %p1076_p2, %p1070_p5 }
 0x5d5   : > { %1080 = shalt.err (!%p1077_p6)
}
 0x5d6   : > { %899 = dma.vmem_to_hbm [thread:$0]  (%p1306_p4), %s1409_s26, 128, %s1407_s23, %s699_s25  }
 0x5d7 PF: > { %s1484_s29 = sld [smem:[#allocation12_spill]]  ;;  %s1485_s21 = sld [smem:[#allocation13_spill]] }
 0x5d8   : > { %p921_p8 = scmp.ge.s32.totalorder %s1123_s20, 2 }
 0x5dd   : > { %s724_s12 = sand.u32 1, %s1484_s29   ;;  %p1486_p13 = scmp.ne.s32.totalorder %s1485_s21, 0 }
 0x5de   : > { %s725_s11 = scalar_lea.sflag [#allocation4], %s724_s12 }
 0x5df   : > { %p913_p3 = pnand %p921_p8, %p1486_p13 }
 0x5e1   : > { %1106 = dma.done.wait (!%p913_p3), %s725_s11, 128  }
 0x5e2   : > { %1108 = vsyncadd (!%p913_p3), %s725_s11, 4294967168  ;;  %p25_p7 = scmp.ge.s32.totalorder %s1296_s24, 5   ;;  %s1487_s17 = smov %s1115_s18 }
 0x5e3   : > { %s1488_s18 = smov %s1119_s19  ;;  %s1489_s19 = smov %s1312_s16 }
 0x5e4   : > { %s1490_s20 = smov %s1296_s24  ;;  %27 = sbr.rel (!%p25_p7) target bundleno = 8 (0x8), region = 117 }
 0x5eb   :  { %730 = vsyncpa [#allocation3], 1 }
 0x5ec   :  { %732 = vsyncpa [#allocation3 + $0x1], 1 }
 0x5ed   :  { %733 = vsyncpa [#allocation6], 1 }
 0x5ee   :  { %734 = vsyncpa [#allocation4], 1 }
 0x5ef   :  { %736 = vsyncpa [#allocation4 + $0x1], 1 }

</bundles_post_ra>
